<compile_context>
chip_gen: v6e
topology: v6e:2x2x1
jax: 0.10.0
libtpu: 0.0.40
codegen_flags: <defaults>
</compile_context>

<pallas_src>
import math

import jax
import jax.numpy as jnp
from jax.experimental import pallas as pl
from jax.experimental.pallas import tpu as pltpu


def _round_up(x: int, m: int) -> int:
    return ((x + m - 1) // m) * m


# ----------------------------------------------------------------------------
# Kernel: one M-tile of the LoRA-augmented QKV projection.
#   x_ref    : (TM, C)      current token tile
#   wqkv_ref : (C, 3C)      resident
#   bqkv_ref : (1, 3C)      resident
#   a_ref    : (C, 2r)      resident, [A_q | A_v] fused along the output dim
#   bq_ref   : (r, C)       resident
#   bv_ref   : (r, C)       resident
#   out_ref  : (TM, 3C)
# ----------------------------------------------------------------------------
def _lora_qkv_kernel(x_ref, wqkv_ref, bqkv_ref, a_ref, bq_ref, bv_ref, out_ref):
    x = x_ref[...]                                   # (TM, C) f32
    C = x_ref.shape[1]
    r = bq_ref.shape[0]

    # Fused base projection + bias.
    qkv = jnp.dot(x, wqkv_ref[...], preferred_element_type=jnp.float32)
    qkv = qkv + bqkv_ref[...]                        # (TM, 3C)

    # Fused LoRA "A" stage: one MXU push instead of two tiny-K ones.
    xa = jnp.dot(x, a_ref[...], preferred_element_type=jnp.float32)   # (TM, 2r)
    new_q = jnp.dot(xa[:, :r], bq_ref[...], preferred_element_type=jnp.float32)
    new_v = jnp.dot(xa[:, r:], bv_ref[...], preferred_element_type=jnp.float32)

    # Direct slice stores — no concatenate / extra VMEM temporary.
    out_ref[:, :C] = (qkv[:, :C] + new_q).astype(out_ref.dtype)
    out_ref[:, C:2 * C] = qkv[:, C:2 * C].astype(out_ref.dtype)
    out_ref[:, 2 * C:] = (qkv[:, 2 * C:] + new_v).astype(out_ref.dtype)


def lora_qkv(x, w_qkv, b_qkv, a_q, b_q, a_v, b_v, *, tm: int = 256):
    """LoRA-augmented QKV: x (B, N, C) -> (B, N, 3C).

    w_qkv: (C, 3C), b_qkv: (3C,), a_q/a_v: (C, r), b_q/b_v: (r, C).
    """
    B, N, C = x.shape
    r = a_q.shape[1]
    M = B * N

    x2d = x.reshape(M, C)

    # Token tile: TM rows per grid step (sublane-aligned). Pad M so the grid
    # divides evenly; padded rows are sliced off afterwards.
    TM = min(tm, _round_up(M, 8))
    M_pad = _round_up(M, TM)
    if M_pad != M:
        x2d = jnp.pad(x2d, ((0, M_pad - M), (0, 0)))

    a_fused = jnp.concatenate([a_q, a_v], axis=1)          # (C, 2r)
    b2d = b_qkv.reshape(1, 3 * C)

    grid = (M_pad // TM,)
    out = pl.pallas_call(
        _lora_qkv_kernel,
        out_shape=jax.ShapeDtypeStruct((M_pad, 3 * C), jnp.float32),
        grid=grid,
        in_specs=[
            pl.BlockSpec((TM, C), lambda i: (i, 0)),        # x tile (pipelined)
            pl.BlockSpec((C, 3 * C), lambda i: (0, 0)),     # W_qkv (resident)
            pl.BlockSpec((1, 3 * C), lambda i: (0, 0)),     # bias  (resident)
            pl.BlockSpec((C, 2 * r), lambda i: (0, 0)),     # [A_q | A_v]
            pl.BlockSpec((r, C), lambda i: (0, 0)),         # B_q
            pl.BlockSpec((r, C), lambda i: (0, 0)),         # B_v
        ],
        out_specs=pl.BlockSpec((TM, 3 * C), lambda i: (i, 0)),
        compiler_params=pltpu.CompilerParams(
            dimension_semantics=("parallel",)),
    )(x2d, w_qkv, b2d, a_fused, b_q, b_v)

    return out[:M].reshape(B, N, 3 * C)


# ----------------------------------------------------------------------------
# Pure-JAX reference (mirrors _LoRA_qkv.forward).
# ----------------------------------------------------------------------------
def _reference_lora_qkv(x, w_qkv, b_qkv, a_q, b_q, a_v, b_v):
    B, N, C = x.shape
    qkv = x @ w_qkv + b_qkv
    qkv = qkv.at[:, :, :C].add((x @ a_q) @ b_q)
    qkv = qkv.at[:, :, 2 * C:].add((x @ a_v) @ b_v)
    return qkv


def init_params(key, C, r):
    k = jax.random.split(key, 6)
    bound = 1.0 / math.sqrt(C)
    w_qkv = jax.random.uniform(k[0], (C, 3 * C), jnp.float32, -bound, bound)
    b_qkv = jax.random.uniform(k[1], (3 * C,), jnp.float32, -bound, bound)
    # LoRA A: kaiming-uniform-ish; B: nonzero here so the LoRA path is exercised
    # in the numerical check (real init would be zeros).
    a_q = jax.random.uniform(k[2], (C, r), jnp.float32, -bound, bound)
    a_v = jax.random.uniform(k[3], (C, r), jnp.float32, -bound, bound)
    b_q = jax.random.normal(k[4], (r, C), jnp.float32) * 0.1
    b_v = jax.random.normal(k[5], (r, C), jnp.float32) * 0.1
    return dict(w_qkv=w_qkv, b_qkv=b_qkv, a_q=a_q, b_q=b_q, a_v=a_v, b_v=b_v)


if __name__ == "__main__":
    key = jax.random.PRNGKey(0)
    B, N, C, r = 2, 16, 32, 4            # small stand-ins for (B, num_patches, 768, 4)

    kx, kp = jax.random.split(key, 2)
    x = jax.random.normal(kx, (B, N, C), jnp.float32)
    p = init_params(kp, C, r)

    qkv = lora_qkv(x, p["w_qkv"], p["b_qkv"], p["a_q"], p["b_q"],
                   p["a_v"], p["b_v"])
    jax.block_until_ready(qkv)

    ref = _reference_lora_qkv(x, p["w_qkv"], p["b_qkv"], p["a_q"], p["b_q"],
                              p["a_v"], p["b_v"])
    assert qkv.shape == (B, N, 3 * C)
    assert jnp.allclose(qkv, ref, atol=1e-4), "LoRA-QKV mismatch vs reference"

    print("KERNEL_OK")
</pallas_src>

<mosaic_0001>
module attributes {stable_mosaic.version = 11 : i64} {
  func.func @_lora_qkv_kernel(%arg0: i32, %arg1: memref<32x32xf32, #tpu.memory_space<vmem>>, %arg2: memref<32x96xf32, #tpu.memory_space<vmem>>, %arg3: memref<1x96xf32, #tpu.memory_space<vmem>>, %arg4: memref<32x8xf32, #tpu.memory_space<vmem>>, %arg5: memref<4x32xf32, #tpu.memory_space<vmem>>, %arg6: memref<4x32xf32, #tpu.memory_space<vmem>>, %arg7: memref<32x96xf32, #tpu.memory_space<vmem>>) attributes {dimension_semantics = [#tpu.dimension_semantics<parallel>], iteration_bounds = array<i64: 1>, scalar_prefetch = 0 : i64, scratch_operands = 0 : i64, tpu.core_type = #tpu.core_type<tc>, window_params = [{transform_indices = @transform_0, window_bounds = array<i64: 32, 32>}, {pipeline_mode = #tpu.pipeline_mode<synchronous>, transform_indices = @transform_1, window_bounds = array<i64: 32, 96>}, {pipeline_mode = #tpu.pipeline_mode<synchronous>, transform_indices = @transform_2, window_bounds = array<i64: 1, 96>}, {pipeline_mode = #tpu.pipeline_mode<synchronous>, transform_indices = @transform_3, window_bounds = array<i64: 32, 8>}, {pipeline_mode = #tpu.pipeline_mode<synchronous>, transform_indices = @transform_4, window_bounds = array<i64: 4, 32>}, {pipeline_mode = #tpu.pipeline_mode<synchronous>, transform_indices = @transform_5, window_bounds = array<i64: 4, 32>}, {transform_indices = @transform_6, window_bounds = array<i64: 32, 96>}]} {
    %c0 = arith.constant 0 : index
    %c0_0 = arith.constant 0 : index
    %0 = vector.load %arg1[%c0, %c0_0] : memref<32x32xf32, #tpu.memory_space<vmem>>, vector<32x32xf32>
    %c0_1 = arith.constant 0 : index
    %c0_2 = arith.constant 0 : index
    %1 = vector.load %arg2[%c0_1, %c0_2] : memref<32x96xf32, #tpu.memory_space<vmem>>, vector<32x96xf32>
    %cst = arith.constant dense<0.000000e+00> : vector<32x96xf32>
    %2 = tpu.matmul %0, %1, %cst {dimension_numbers = #tpu.dot_dimension_numbers<[1], [0], [0], [1], [0, 0, 1, 1], [], []>} : vector<32x32xf32>, vector<32x96xf32>, vector<32x96xf32> -> vector<32x96xf32>
    %c0_3 = arith.constant 0 : index
    %c0_4 = arith.constant 0 : index
    %3 = vector.load %arg3[%c0_3, %c0_4] : memref<1x96xf32, #tpu.memory_space<vmem>>, vector<1x96xf32>
    %4 = vector.broadcast %3 : vector<1x96xf32> to vector<32x96xf32>
    %5 = arith.addf %2, %4 : vector<32x96xf32>
    %c0_5 = arith.constant 0 : index
    %c0_6 = arith.constant 0 : index
    %6 = vector.load %arg4[%c0_5, %c0_6] : memref<32x8xf32, #tpu.memory_space<vmem>>, vector<32x8xf32>
    %cst_7 = arith.constant dense<0.000000e+00> : vector<32x8xf32>
    %7 = tpu.matmul %0, %6, %cst_7 {dimension_numbers = #tpu.dot_dimension_numbers<[1], [0], [0], [1], [0, 0, 1, 1], [], []>} : vector<32x32xf32>, vector<32x8xf32>, vector<32x8xf32> -> vector<32x8xf32>
    %8 = vector.extract_strided_slice %7 {offsets = [0, 0], sizes = [32, 4], strides = [1, 1]} : vector<32x8xf32> to vector<32x4xf32>
    %c0_8 = arith.constant 0 : index
    %c0_9 = arith.constant 0 : index
    %9 = vector.load %arg5[%c0_8, %c0_9] : memref<4x32xf32, #tpu.memory_space<vmem>>, vector<4x32xf32>
    %cst_10 = arith.constant dense<0.000000e+00> : vector<32x32xf32>
    %10 = tpu.matmul %8, %9, %cst_10 {dimension_numbers = #tpu.dot_dimension_numbers<[1], [0], [0], [1], [0, 0, 1, 1], [], []>} : vector<32x4xf32>, vector<4x32xf32>, vector<32x32xf32> -> vector<32x32xf32>
    %11 = vector.extract_strided_slice %7 {offsets = [0, 4], sizes = [32, 4], strides = [1, 1]} : vector<32x8xf32> to vector<32x4xf32>
    %c0_11 = arith.constant 0 : index
    %c0_12 = arith.constant 0 : index
    %12 = vector.load %arg6[%c0_11, %c0_12] : memref<4x32xf32, #tpu.memory_space<vmem>>, vector<4x32xf32>
    %cst_13 = arith.constant dense<0.000000e+00> : vector<32x32xf32>
    %13 = tpu.matmul %11, %12, %cst_13 {dimension_numbers = #tpu.dot_dimension_numbers<[1], [0], [0], [1], [0, 0, 1, 1], [], []>} : vector<32x4xf32>, vector<4x32xf32>, vector<32x32xf32> -> vector<32x32xf32>
    %14 = vector.extract_strided_slice %5 {offsets = [0, 0], sizes = [32, 32], strides = [1, 1]} : vector<32x96xf32> to vector<32x32xf32>
    %15 = arith.addf %14, %10 : vector<32x32xf32>
    %c0_14 = arith.constant 0 : index
    %c0_15 = arith.constant 0 : index
    %16 = vector.load %arg7[%c0_14, %c0_15] : memref<32x96xf32, #tpu.memory_space<vmem>>, vector<32x32xf32>
    tpu.vector_store %arg7[%c0_14, %c0_15], %15 {strides = array<i32>} : memref<32x96xf32, #tpu.memory_space<vmem>>, vector<32x32xf32>,
    %17 = vector.extract_strided_slice %5 {offsets = [0, 32], sizes = [32, 32], strides = [1, 1]} : vector<32x96xf32> to vector<32x32xf32>
    %c0_16 = arith.constant 0 : index
    %c32 = arith.constant 32 : index
    %18 = vector.load %arg7[%c0_16, %c32] : memref<32x96xf32, #tpu.memory_space<vmem>>, vector<32x32xf32>
    tpu.vector_store %arg7[%c0_16, %c32], %17 {strides = array<i32>} : memref<32x96xf32, #tpu.memory_space<vmem>>, vector<32x32xf32>,
    %19 = vector.extract_strided_slice %5 {offsets = [0, 64], sizes = [32, 32], strides = [1, 1]} : vector<32x96xf32> to vector<32x32xf32>
    %20 = arith.addf %19, %13 : vector<32x32xf32>
    %c0_17 = arith.constant 0 : index
    %c64 = arith.constant 64 : index
    %21 = vector.load %arg7[%c0_17, %c64] : memref<32x96xf32, #tpu.memory_space<vmem>>, vector<32x32xf32>
    tpu.vector_store %arg7[%c0_17, %c64], %20 {strides = array<i32>} : memref<32x96xf32, #tpu.memory_space<vmem>>, vector<32x32xf32>,
    return
  }
  func.func @transform_0(%arg0: i32) -> (i32, i32) {
    %c0_i32 = arith.constant 0 : i32
    %c0_i32_0 = arith.constant 0 : i32
    return %arg0, %c0_i32 : i32, i32
  }
  func.func @transform_1(%arg0: i32) -> (i32, i32) {
    %c0_i32 = arith.constant 0 : i32
    %c0_i32_0 = arith.constant 0 : i32
    %c0_i32_1 = arith.constant 0 : i32
    return %c0_i32, %c0_i32_0 : i32, i32
  }
  func.func @transform_2(%arg0: i32) -> (i32, i32) {
    %c0_i32 = arith.constant 0 : i32
    %c0_i32_0 = arith.constant 0 : i32
    %c0_i32_1 = arith.constant 0 : i32
    return %c0_i32, %c0_i32_0 : i32, i32
  }
  func.func @transform_3(%arg0: i32) -> (i32, i32) {
    %c0_i32 = arith.constant 0 : i32
    %c0_i32_0 = arith.constant 0 : i32
    %c0_i32_1 = arith.constant 0 : i32
    return %c0_i32, %c0_i32_0 : i32, i32
  }
  func.func @transform_4(%arg0: i32) -> (i32, i32) {
    %c0_i32 = arith.constant 0 : i32
    %c0_i32_0 = arith.constant 0 : i32
    %c0_i32_1 = arith.constant 0 : i32
    return %c0_i32, %c0_i32_0 : i32, i32
  }
  func.func @transform_5(%arg0: i32) -> (i32, i32) {
    %c0_i32 = arith.constant 0 : i32
    %c0_i32_0 = arith.constant 0 : i32
    %c0_i32_1 = arith.constant 0 : i32
    return %c0_i32, %c0_i32_0 : i32, i32
  }
  func.func @transform_6(%arg0: i32) -> (i32, i32) {
    %c0_i32 = arith.constant 0 : i32
    %c0_i32_0 = arith.constant 0 : i32
    return %arg0, %c0_i32 : i32, i32
  }
}

</mosaic_0001>

<bundles_post_ra>
// kernel: tpu_custom_call.1
= control target key start
LH: loop header
LB: loop body
LE: loop exit
PB: predicated region body
PF: predicated region fallthrough
CT: control target
= control target key end

     0   :  { %11 = vsyncpa [#allocation3], 0  ;;  %s752_s0 = inlined_call_operand.vmem [shape: f32[32,32], index: 0, kind: input, shape index: {}]   ;;  %s753_s1 = inlined_call_operand.hbm [shape: f32[32,96], index: 1, kind: input, shape index: {}]   ;;  %s754_s2 = inlined_call_operand.vmem [shape: f32[1,96], index: 2, kind: input, shape index: {}]   ;;  %s755_s3 = inlined_call_operand.vmem [shape: f32[32,8], index: 3, kind: input, shape index: {}]   ;;  %s756_s4 = inlined_call_operand.vmem [shape: f32[4,32], index: 4, kind: input, shape index: {}]   ;;  %s757_s5 = inlined_call_operand.vmem [shape: f32[4,32], index: 5, kind: input, shape index: {}]   ;;  %s758_s6 = inlined_call_operand.hbm [shape: f32[32,96], index: 6, kind: output, shape index: {}]  }
   0x1   :  { %12 = vsyncpa [#allocation4], 0  ;;  %s642_s21 = smov [#allocation2]  }
   0x2   :  { %s20_s22 = sshll.u32 %s642_s21, 4  ;;  %s21_s22 = int_to_ptr.vmem [resolvable:$true] %s20_s22 }
   0x3   :  { %s606_s23 = scalar_lea.vmem %s21_s22, 512  ;;  %p611_p1 = scmp.lt.s32.totalorder %s21_s22, %s21_s22 }
   0x4   :  { %p607_p0 = scmp.ne.s32.totalorder %s21_s22, %s606_s23  ;;  %p612_p2 = scmp.lt.s32.totalorder %s606_s23, %s606_s23 }
   0x6   :  { %p613_p3 = por %p612_p2, %p611_p1 }
   0x8   :  { %p614_p4 = pnand %p613_p3, %p607_p0 }
   0xa   :  { %617 = shalt.err (!%p614_p4)
}
   0xb   :  { %s643_s24 = smov 128   ;;  %s644_s25 = smov 8  }
   0xc   :  { %26 = dma.hbm_to_vmem [thread:$0]  %s753_s1, 512, %s21_s22, [#allocation3], %s643_s24, %s643_s24, %s644_s25  }
   0xd   :  { %638 = dma.done.wait [#allocation3], 512  }
   0xe   :  { %639 = vsyncadd [#allocation3], 4294966784  ;;  %vm53_vm0 = vcmask 261120   ;;  %v154_v0 = vld [vmem:[%s755_s3 + $0x18] sm:$0xff]  ;;  %v153_v1 = vld [vmem:[%s755_s3 + $0x10] sm:$0xff]  ;;  %vm254_vm1 = vcmask 1043456  }
   0xf   :  { %562 = vmatprep.subr.mxu1 %v154_v0  ;;  %v38_v2 = vld [vmem:[%s752_s0] sm:$0xff]  ;;  %v152_v3 = vld [vmem:[%s755_s3 + $0x8] sm:$0xff]  ;;  %v45_v4 = vld [vmem:[#allocation2 + $0x18] sm:$0xff]  ;;  %vm241_vm2 = vcmask 31744   ;;  %s645_s21 = smov 124   ;;  %vm456_vm3 = vcmask 523520  }
  0x10   :  { %563 = vmatpush3.msra.mxu1 %v154_v0  ;;  %570 = vmatprep.mubr.msk.f32.mxu1 %vm53_vm0, %v38_v2  ;;  %v44_v5 = vld [vmem:[#allocation2 + $0x10] sm:$0xff]  ;;  %v151_v6 = vld [vmem:[%s755_s3] sm:$0xff]  ;;  %v43_v7 = vld [vmem:[#allocation2 + $0x8] sm:$0xff]  ;;  %vm481_vm4 = vcmask 785920   ;;  %s647_s22 = smov [#allocation5]  }
  0x11   :  { %564 = vmatprep.subr.mxu1 %v153_v1  ;;  %548 = vmatprep.subr.mxu0 %v45_v4  ;;  %v39_v8 = vld [vmem:[%s752_s0 + $0x8] sm:$0xff]  ;;  %v42_v9 = vld [vmem:[#allocation2] sm:$0xff]  ;;  %v40_v10 = vld [vmem:[%s752_s0 + $0x10] sm:$0xff]  ;;  %s491_s23 = sshll.u32 %s647_s22, 4  ;;  %s492_s23 = int_to_ptr.vmem [resolvable:$true] %s491_s23 }
  0x12   :  { %565 = vmatpush3.msra.mxu1 %v153_v1  ;;  %549 = vmatpush3.msra.mxu0 %v45_v4  ;;  %v41_v11 = vld [vmem:[%s752_s0 + $0x18] sm:$0xff]  ;;  %v240_v12 = vld [vmem:[%s756_s4] sm:$0xf]  ;;  %s618_s26 = scalar_lea.vmem %s492_s23, 512  ;;  %p623_p6 = scmp.lt.s32.totalorder %s492_s23, %s492_s23 }
  0x13   :  { %566 = vmatprep.subr.mxu1 %v152_v3  ;;  %550 = vmatprep.subr.mxu0 %v44_v5  ;;  %v343_v13 = vld [vmem:[%s757_s5] sm:$0xf]  ;;  %p619_p5 = scmp.ne.s32.totalorder %s492_s23, %s618_s26  ;;  %p624_p7 = scmp.lt.s32.totalorder %s618_s26, %s618_s26 }
  0x14   :  { %567 = vmatpush3.msra.mxu1 %v152_v3  ;;  %551 = vmatpush3.msra.mxu0 %v44_v5  ;;  %v503_v25 = vld [vmem:[%s754_s2] ss:$0 sm:$0xff]  ;;  %s646_s2 = smov 64  }
  0x15   :  { %568 = vmatprep.subr.mxu1 %v151_v6  ;;  %552 = vmatprep.subr.mxu0 %v43_v7  ;;  %p625_p8 = por %p624_p7, %p623_p6 }
  0x16   :  { %569 = vmatpush3.msra.mxu1 %v151_v6  ;;  %553 = vmatpush3.msra.mxu0 %v43_v7 }
  0x17   :  { %571 = vmatmul.mubr.msk.f32.vlgmr.msra.gmra.mxu1 %vm53_vm0, %v39_v8  ;;  %554 = vmatprep.subr.mxu0 %v42_v9  ;;  %p626_p9 = pnand %p625_p8, %p619_p5 }
  0x18   :  { %573 = vmatprep.mubr.msk.f32.mxu1 %vm53_vm0, %v40_v10  ;;  %555 = vmatpush3.msra.mxu0 %v42_v9 }
  0x19   :  { %556 = vmatprep.mubr.msk.f32.mxu0 %vm53_vm0, %v38_v2  ;;  %576 = vmatprep.subr.msk.mxu0 %vm254_vm1, %v240_v12 }
  0x1a   :  { %557 = vmatmul.mubr.msk.f32.vlgmr.msra.gmra.mxu0 %vm53_vm0, %v39_v8  ;;  %584 = vmatprep.subr.msk.mxu1 %vm254_vm1, %v343_v13 }
  0x1b   :  { %574 = vmatmul.mubr.msk.f32.gmra.mxu1 %vm53_vm0, %v41_v11  ;;  %559 = vmatprep.mubr.msk.f32.mxu0 %vm53_vm0, %v40_v10 }
  0x1c   :  { %577 = vmatpush3.msk.msra.mxu0 %vm254_vm1, %v240_v12  ;;  %585 = vmatpush3.msk.msra.mxu1 %vm254_vm1, %v343_v13 }
  0x1e   :  { %560 = vmatmul.mubr.msk.f32.gmra.mxu0 %vm53_vm0, %v41_v11 }
  0xd7   :  { %v572_v14 = vpop.f32.mrf.mxu1 }
  0xd9   :  { %v221_v15 = vpop.f32.mrf.mxu1 }
  0xda   :  { %344 = vrot.lane.b32.xlu0 %v221_v15, %s645_s21  ;;  %578 = vmatprep.mubr.msk.f32.mxu0 %vm241_vm2, %v221_v15  ;;  %v558_v22 = vpop.f32.mrf.mxu0 }
  0xdb   :  { %v575_v16 = vpop.f32.mrf.mxu1  ;;  %579 = vmatmul.mubr.msk.f32.vlgmr.msra.gmra.mxu0 %vm241_vm2, %v572_v14  ;;  %v138_v27 = vadd.f32 %v558_v22, %v503_v25 }
  0xdc   :  { %v132_v23 = vpop.f32.mrf.mxu0 }
  0xdd   :  { %v231_v17 = vpop.f32.mrf.mxu1  ;;  %v133_v28 = vadd.f32 %v503_v25, %v132_v23 }
  0xde   :  { %346 = vrot.lane.b32.xlu0 %v572_v14, %s645_s21  ;;  %348 = vrot.lane.b32.xlu1 %v231_v17, %s645_s21  ;;  %v561_v24 = vpop.f32.mrf.mxu0 }
  0xdf   :  { %581 = vmatprep.mubr.msk.f32.mxu0 %vm241_vm2, %v231_v17  ;;  %v148_v31 = vadd.f32 %v561_v24, %v503_v25 }
  0xe0   :  { %582 = vmatmul.mubr.msk.f32.gmra.mxu0 %vm241_vm2, %v575_v16  ;;  %v142_v26 = vpop.f32.mrf.mxu0 }
  0xe1   :  { %v143_v34 = vadd.f32 %v503_v25, %v142_v26 }
  0xe2   :  { %350 = vrot.lane.b32.xlu1 %v575_v16, %s645_s21 }
 0x14c   :  { %v345_v18 = vpop.permute.xlu0 %344 }
 0x14d   :  { %586 = vmatprep.mubr.msk.f32.mxu1 %vm241_vm2, %v345_v18 }
 0x150   :  { %v347_v19 = vpop.permute.xlu0 %346  ;;  %v349_v20 = vpop.permute.xlu1 %348 }
 0x151   :  { %587 = vmatmul.mubr.msk.f32.vlgmr.msra.gmra.mxu1 %vm241_vm2, %v347_v19 }
 0x152   :  { %589 = vmatprep.mubr.msk.f32.mxu1 %vm241_vm2, %v349_v20 }
 0x154   :  { %v351_v21 = vpop.permute.xlu1 %350 }
 0x155   :  { %590 = vmatmul.mubr.msk.f32.gmra.mxu1 %vm241_vm2, %v351_v21 }
 0x19b   :  { %v580_v29 = vpop.f32.mrf.mxu0 }
 0x19c   :  { %v449_v30 = vadd.f32 %v580_v29, %v138_v27 }
 0x19d   :  { %v324_v32 = vpop.f32.mrf.mxu0 }
 0x19e   :  { %453 = vst.msk [vmem:[#allocation5 + $0x8] sm:$0xff] %vm53_vm0, %v449_v30  ;;  %v448_v33 = vadd.f32 %v324_v32, %v133_v28 }
 0x19f   :  { %458 = vst.msk [vmem:[#allocation5 + $0x8] sm:$0xff] %vm456_vm3, %v138_v27 }
 0x1a0   :  { %452 = vst.msk [vmem:[#allocation5] sm:$0xff] %vm53_vm0, %v448_v33  ;;  %v583_v35 = vpop.f32.mrf.mxu0 }
 0x1a1   :  { %457 = vst.msk [vmem:[#allocation5] sm:$0xff] %vm456_vm3, %v133_v28  ;;  %v451_v36 = vadd.f32 %v583_v35, %v148_v31 }
 0x1a2   :  { %v334_v37 = vpop.f32.mrf.mxu0 }
 0x1a3   :  { %455 = vst.msk [vmem:[#allocation5 + $0x18] sm:$0xff] %vm53_vm0, %v451_v36  ;;  %v450_v38 = vadd.f32 %v334_v37, %v143_v34 }
 0x1a4   :  { %460 = vst.msk [vmem:[#allocation5 + $0x18] sm:$0xff] %vm456_vm3, %v148_v31 }
 0x1a5   :  { %454 = vst.msk [vmem:[#allocation5 + $0x10] sm:$0xff] %vm53_vm0, %v450_v38 }
 0x1a6   :  { %459 = vst.msk [vmem:[#allocation5 + $0x10] sm:$0xff] %vm456_vm3, %v143_v34 }
 0x211   :  { %v588_v39 = vpop.f32.mrf.mxu1 }
 0x212   :  { %467 = vrot.lane.b32.xlu1 %v588_v39, %s646_s2 }
 0x213   :  { %v429_v40 = vpop.f32.mrf.mxu1 }
 0x214   :  { %465 = vrot.lane.b32.xlu0 %v429_v40, %s646_s2 }
 0x215   :  { %v591_v41 = vpop.f32.mrf.mxu1 }
 0x216   :  { %471 = vrot.lane.b32.xlu1 %v591_v41, %s646_s2 }
 0x217   :  { %v439_v42 = vpop.f32.mrf.mxu1 }
 0x218   :  { %469 = vrot.lane.b32.xlu0 %v439_v42, %s646_s2 }
 0x284   :  { %v468_v43 = vpop.permute.xlu1 %467 }
 0x285   :  { %v478_v44 = vadd.f32 %v468_v43, %v138_v27 }
 0x286   :  { %v466_v45 = vpop.permute.xlu0 %465 }
 0x287   :  { %v477_v46 = vadd.f32 %v466_v45, %v133_v28  ;;  %483 = vst.msk [vmem:[#allocation5 + $0x8] sm:$0xff] %vm481_vm4, %v478_v44 }
 0x288   :  { %v472_v47 = vpop.permute.xlu1 %471 }
 0x289   :  { %v480_v48 = vadd.f32 %v472_v47, %v148_v31  ;;  %482 = vst.msk [vmem:[#allocation5] sm:$0xff] %vm481_vm4, %v477_v46 }
 0x28a   :  { %v470_v49 = vpop.permute.xlu0 %469 }
 0x28b   :  { %v479_v50 = vadd.f32 %v470_v49, %v143_v34  ;;  %485 = vst.msk [vmem:[#allocation5 + $0x18] sm:$0xff] %vm481_vm4, %v480_v48 }
 0x28d   :  { %484 = vst.msk [vmem:[#allocation5 + $0x10] sm:$0xff] %vm481_vm4, %v479_v50 }
 0x28e   :  { %629 = shalt.err (!%p626_p9)
}
 0x28f   :  { %497 = dma.vmem_to_hbm [thread:$0]  %s492_s23, 512, %s758_s6, [#allocation4], %s643_s24, %s643_s24, %s644_s25  }
 0x290   :  { %640 = dma.done.wait [#allocation4], 512  }
 0x291   :  { %641 = vsyncadd [#allocation4], 4294966784 }
 0x292   :  { %501 = vsyncpa [#allocation3], 1 }
 0x293   :  { %502 = vsyncpa [#allocation4], 1 }

</bundles_post_ra>
